<compile_context>
chip_gen: v5e
topology: v5e:2x2
jax: 0.10.0
libtpu: 0.0.40
codegen_flags: <defaults>
</compile_context>

<pallas_src>
import math

import jax
import jax.numpy as jnp
from jax.experimental import pallas as pl
from jax.experimental.pallas import tpu as pltpu


def _build_pe_table(d_model: int, max_len: int = 1000, dtype=jnp.float32) -> jnp.ndarray:
    """Sinusoidal PE table [max_len, d_model], computed in f32, stored in `dtype`."""
    position = jnp.arange(max_len, dtype=jnp.float32)[:, None]            # [max_len, 1]
    div_term = jnp.exp(
        jnp.arange(0, d_model, 2, dtype=jnp.float32) * (-math.log(10000.0) / d_model)
    )                                                                      # [d_model//2]
    angles = position * div_term                                           # [max_len, d_model//2]
    pe = jnp.zeros((max_len, d_model), dtype=jnp.float32)
    pe = pe.at[:, 0::2].set(jnp.sin(angles))
    pe = pe.at[:, 1::2].set(jnp.cos(angles))
    return pe.astype(dtype)


def _add_pe_kernel(x_ref, pe_ref, o_ref):
    # x_ref/o_ref: (1, ts, d) tile of one batch element; pe_ref: (ts, d) shared PE tile.
    o_ref[...] = x_ref[...] + pe_ref[...][None, :, :]


# Below this a fused XLA elementwise add beats any standalone kernel launch / fusion barrier.
_SMALL_BYTES = 256 * 1024
# ~4 MiB blocks: 5 pipelined buffers (x*2 + out*2 + PE*1) ~= 20 MiB, covered by the explicit
# vmem_limit below on every chip (v5e 16 MiB scoped default is raised; v7x 64 MiB physical ok).
_TARGET_BLOCK_BYTES = 4 * 1024 * 1024


def positional_encoding_forward(x: jnp.ndarray, pe_table: jnp.ndarray) -> jnp.ndarray:
    """
    x:        [batch, seq_len, d_model]
    pe_table: [max_len, d_model]  (ideally already in x.dtype; max_len >= seq_len)
    Returns x + pe_table[:seq_len] broadcast over batch (PyTorch PositionalEncoding.forward).
    """
    b, s, d = x.shape
    max_len = pe_table.shape[0]
    assert s <= max_len, f"seq_len={s} exceeds PE table max_len={max_len}"

    # Prefer building the table in the compute dtype at init; cast here only as a safety net.
    pe = pe_table if pe_table.dtype == x.dtype else pe_table.astype(x.dtype)

    itemsize = jnp.dtype(x.dtype).itemsize
    total_bytes = b * s * d * itemsize

    if total_bytes < _SMALL_BYTES or d % 128 != 0:
        # Tiny tensors, or d_model not lane-aligned: let XLA fuse the broadcast add with
        # surrounding ops (a relayout/flatten-based Pallas path would cost more than it saves).
        # TODO(synk): pad d_model to a multiple of 128 inside a kernel path if profiling ever
        # shows the fused XLA add losing for non-aligned d_model.
        return x + pe[:s][None]

    # ---- seq-row tile size: ~4 MiB blocks, multiple of 8 sublanes (or full extent) ----
    row_bytes = d * itemsize
    if s * row_bytes <= _TARGET_BLOCK_BYTES:
        ts = s                                              # full extent: always legal
    else:
        ts = max(8, (_TARGET_BLOCK_BYTES // row_bytes) // 8 * 8)
        ts = min(ts, s)
    n_seq_tiles = pl.cdiv(s, ts)

    # v7x has 2 TensorCores sharing HBM: ensure a 'parallel' axis has >= 2 steps even at b == 1
    # so this mem-bound add isn't pinned to a single core (no effect on v5e/v6e single-TC).
    if n_seq_tiles * b < 2 and s >= 16:
        ts = min(ts, ((pl.cdiv(s, 2) + 7) // 8) * 8)
        n_seq_tiles = pl.cdiv(s, ts)

    # If the PE tile height is sublane-aligned we can feed the FULL table (no slice copy);
    # otherwise (ts == s, s % 8 != 0) slice so the PE block equals its full array dims.
    pe_in = pe if ts % 8 == 0 else pe[:s]

    block_bytes = ts * row_bytes
    # x and out double-buffered, PE single-buffered, plus headroom for Mosaic internal scratch.
    # Raise above v5e's 16 MiB scoped default when needed; cap well under v7x's 64 MiB physical.
    vmem_limit = min(max(5 * block_bytes + (4 << 20), 16 << 20), 48 << 20)

    cost = pl.CostEstimate(
        flops=b * s * d,
        transcendentals=0,
        bytes_accessed=2 * total_bytes + s * d * itemsize,   # read x + write out + read PE once
    )

    # PE block index is constant across the (innermost) batch axis -> one buffer is enough;
    # reclaims a block of VMEM (matters most on v7x with half the VMEM of v5e/v6e).
    pe_spec = pl.BlockSpec((ts, d), lambda j, i: (j, 0), pipeline_mode=pl.Buffered(1))
    # TODO(synk): for batch == 1, generate the PE tile in-kernel (iota + sin/cos on the idle
    # EUP) to drop the PE HBM read entirely, once sin/cos lowering is confirmed on this build.

    out = pl.pallas_call(
        _add_pe_kernel,
        out_shape=jax.ShapeDtypeStruct((b, s, d), x.dtype),
        grid_spec=pltpu.PrefetchScalarGridSpec(
            num_scalar_prefetch=0,
            # Batch innermost (fastest) so the PE tile stays VMEM-resident across batch steps.
            grid=(n_seq_tiles, b),
            in_specs=[
                pl.BlockSpec((1, ts, d), lambda j, i: (i, j, 0)),   # x tile
                pe_spec,                                            # shared PE tile
            ],
            out_specs=pl.BlockSpec((1, ts, d), lambda j, i: (i, j, 0)),
        ),
        compiler_params=pltpu.CompilerParams(
            dimension_semantics=("parallel", "parallel"),
            vmem_limit_bytes=vmem_limit,
        ),
        cost_estimate=cost,
    )(x, pe_in)

    return out


if __name__ == "__main__":
    max_len = 1000

    # 1) Small shape consistent with the module (batch=2, seq=8, d_model=32): XLA fallback path.
    b, s, d = 2, 8, 32
    x_small = jax.random.normal(jax.random.PRNGKey(0), (b, s, d), dtype=jnp.float32)
    pe32 = _build_pe_table(d, max_len, dtype=jnp.float32)
    out_small = jax.block_until_ready(positional_encoding_forward(x_small, pe32))
    ref_small = x_small + pe32[None, :s, :]
    assert out_small.shape == (b, s, d)
    assert jnp.allclose(out_small, ref_small, atol=1e-6, rtol=1e-6)

    # 2) Moderate lane-aligned shape: exercises the direct (b, s, d) Pallas path with batch=2.
    b2, s2, d2 = 2, 256, 256
    x_med = jax.random.normal(jax.random.PRNGKey(1), (b2, s2, d2), dtype=jnp.float32)
    pe256 = _build_pe_table(d2, max_len, dtype=jnp.float32)
    out_med = jax.block_until_ready(positional_encoding_forward(x_med, pe256))
    ref_med = x_med + pe256[None, :s2, :]
    assert out_med.shape == (b2, s2, d2)
    assert jnp.allclose(out_med, ref_med, atol=1e-6, rtol=1e-6)

    # 3) batch=1: exercises the forced ">= 2 parallel grid steps" path (v7x megacore sharding).
    b3, s3, d3 = 1, 512, 256
    x_b1 = jax.random.normal(jax.random.PRNGKey(2), (b3, s3, d3), dtype=jnp.float32)
    out_b1 = jax.block_until_ready(positional_encoding_forward(x_b1, pe256))
    ref_b1 = x_b1 + pe256[None, :s3, :]
    assert out_b1.shape == (b3, s3, d3)
    assert jnp.allclose(out_b1, ref_b1, atol=1e-6, rtol=1e-6)

    print("KERNEL_OK")
</pallas_src>

<mosaic_0001>
module attributes {stable_mosaic.version = 11 : i64} {
  func.func @_add_pe_kernel(%arg0: i32, %arg1: i32, %arg2: memref<1x256x256xf32, #tpu.memory_space<vmem>>, %arg3: memref<256x256xf32, #tpu.memory_space<vmem>>, %arg4: memref<1x256x256xf32, #tpu.memory_space<vmem>>) attributes {dimension_semantics = [#tpu.dimension_semantics<parallel>, #tpu.dimension_semantics<parallel>], iteration_bounds = array<i64: 1, 2>, scalar_prefetch = 0 : i64, scratch_operands = 0 : i64, tpu.core_type = #tpu.core_type<tc>, window_params = [{transform_indices = @transform_0, window_bounds = array<i64: 1, 256, 256>}, {pipeline_mode = #tpu.pipeline_mode<synchronous>, transform_indices = @transform_1, window_bounds = array<i64: 256, 256>}, {transform_indices = @transform_2, window_bounds = array<i64: 1, 256, 256>}]} {
    %c0 = arith.constant 0 : index
    %c0_0 = arith.constant 0 : index
    %c0_1 = arith.constant 0 : index
    %0 = vector.load %arg2[%c0, %c0_0, %c0_1] : memref<1x256x256xf32, #tpu.memory_space<vmem>>, vector<1x256x256xf32>
    %c0_2 = arith.constant 0 : index
    %c0_3 = arith.constant 0 : index
    %1 = vector.load %arg3[%c0_2, %c0_3] : memref<256x256xf32, #tpu.memory_space<vmem>>, vector<256x256xf32>
    %2 = vector.shape_cast %1 : vector<256x256xf32> to vector<1x256x256xf32>
    %3 = arith.addf %0, %2 : vector<1x256x256xf32>
    %c0_4 = arith.constant 0 : index
    %c0_5 = arith.constant 0 : index
    %c0_6 = arith.constant 0 : index
    %4 = vector.load %arg4[%c0_4, %c0_5, %c0_6] : memref<1x256x256xf32, #tpu.memory_space<vmem>>, vector<1x256x256xf32>
    tpu.vector_store %arg4[%c0_4, %c0_5, %c0_6], %3 {strides = array<i32>} : memref<1x256x256xf32, #tpu.memory_space<vmem>>, vector<1x256x256xf32>,
    return
  }
  func.func @transform_0(%arg0: i32, %arg1: i32) -> (i32, i32, i32) {
    %c0_i32 = arith.constant 0 : i32
    %c0_i32_0 = arith.constant 0 : i32
    return %arg1, %arg0, %c0_i32 : i32, i32, i32
  }
  func.func @transform_1(%arg0: i32, %arg1: i32) -> (i32, i32) {
    %c0_i32 = arith.constant 0 : i32
    %c0_i32_0 = arith.constant 0 : i32
    return %arg0, %c0_i32 : i32, i32
  }
  func.func @transform_2(%arg0: i32, %arg1: i32) -> (i32, i32, i32) {
    %c0_i32 = arith.constant 0 : i32
    %c0_i32_0 = arith.constant 0 : i32
    return %arg1, %arg0, %c0_i32 : i32, i32, i32
  }
}

</mosaic_0001>

<bundles_post_ra>
// kernel: tpu_custom_call.1
= control target key start
LH: loop header
LB: loop body
LE: loop exit
PB: predicated region body
PF: predicated region fallthrough
CT: control target
= control target key end

     0   :  { %7 = vsyncpa [#allocation3], 0  ;;  %s1151_s0 = inlined_call_operand.hbm [shape: f32[2,256,256], index: 0, kind: input, shape index: {}]   ;;  %s1152_s1 = inlined_call_operand.hbm [shape: f32[1000,256], index: 1, kind: input, shape index: {}]   ;;  %s1153_s2 = inlined_call_operand.hbm [shape: f32[2,256,256], index: 2, kind: output, shape index: {}]  }
   0x1   :  { %9 = vsyncpa [#allocation3 + $0x1], 0 }
   0x2   :  { %10 = vsyncpa [#allocation6], 0 }
   0x3   :  { %11 = vsyncpa [#allocation4], 0 }
   0x4   :  { %13 = vsyncpa [#allocation4 + $0x1], 0  ;;  %s863_s9 = smov 0   ;;  %s865_s10 = smov 0  }
   0x5   :  { %s867_s11 = smov 0   ;;  %s869_s12 = smov 0  }
   0x6   :  { %s871_s13 = smov 0   ;;  %s873_s14 = smov 0  }
   0x7 LB: > { %s599_s15 = sadd.s32 4294967295, %s841_s14   ;;  %s600_s16 = sadd.s32 4294967294, %s841_s14   ;;  %s841_s14 = sphi %s873_s14, %s19_s14   ;;  %s837_s13 = sphi %s871_s13, %s1165_s13   ;;  %s833_s12 = sphi %s869_s12, %s1164_s12   ;;  %s829_s11 = sphi %s867_s11, %s1163_s11   ;;  %s825_s10 = sphi %s865_s10, %s1162_s10   ;;  %s821_s9 = sphi %s863_s9, %s1161_s9  }
   0x8   : > { %p53_p0 = scmp.ne.s32.totalorder %s825_s10, %s821_s9  ;;  %p897_p1 = scmp.eq.s32.totalorder %s599_s15, 0 }
   0x9   : > { %p901_p2 = scmp.eq.s32.totalorder %s599_s15, 1  ;;  %p111_p3 = scmp.eq.s32.totalorder %s600_s16, 1 }
   0xa   : > { %p907_p4 = por %p897_p1, %p53_p0  ;;  %p601_p5 = scmp.ge.s32.totalorder %s841_s14, 1 }
   0xb   : > { %p912_p6 = por %p111_p3, %p53_p0  ;;  %p118_p7 = scmp.lt.s32.totalorder %s841_s14, 3 }
   0xc   : > { %s141_s23 = sshll.u32 %s1152_s1, 4  ;;  %s843_s25 = smov [#allocation5]   ;;  %s142_s23 = int_to_ptr.hbm [resolvable:$true] %s141_s23 }
   0xd   : > { %p920_p8 = pnand %p601_p5, %p118_p7  ;;  %s143_s26 = sshll.u32 %s843_s25, 4  ;;  %s144_s26 = int_to_ptr.vmem [resolvable:$true] %s143_s26 }
   0xe   : > { %p603_p11 = scmp.ge.s32.totalorder %s841_s14, 2  ;;  %s844_s27 = smov 256  }
   0xf   : > { %p626_p9 = pneg %p920_p8  ;;  %s845_s28 = smov 16  }
  0x10   : > { %s28_s29 = sadd.s32 1, %s837_s13  ;;  %s40_s30 = sadd.s32 1, %s829_s11 }
  0x11   : > { %p627_p10 = pnand %p626_p9, %p897_p1  ;;  %p29_p12 = scmp.ge.s32.totalorder %s28_s29, 2 }
  0x12   : > { %p47_p13 = scmp.ne.s32.totalorder %s829_s11, %s825_s10  ;;  %p48_p0 = scmp.eq.s32.totalorder %s841_s14, 0 }
  0x13   : > { %629 = dma.hbm_to_vmem [thread:$0]  (!%p627_p10), %s142_s23, 8192, %s144_s26, [#allocation6], %s844_s27, %s844_s27, %s845_s28  }
  0x14   : > { %s1167_s29 = smov (%p29_p12, %s28_s29), 0  ;;  %p939_p3 = por %p48_p0, %p47_p13 }
  0x15   : > { %p945_p5 = por %p901_p2, %p47_p13  ;;  %s35_s5 = ssub.s32 %s837_s13, %s1167_s29 }
  0x16   : > { %p639_p7 = scmp.lt.s32.totalorder %s841_s14, 2  ;;  %p38_p9 = scmp.eq.s32.totalorder %s35_s5, 0 }
  0x17   : > { %s157_s6 = sand.u32 1, %s829_s11   ;;  %s616_s15 = sshll.u32 %s837_s13, 9 }
  0x18   : > { %s604_s7 = sshll.u32 %s157_s6, 9  ;;  %s169_s22 = scalar_lea.hbm %s1151_s0, %s616_s15 }
  0x19   : > { %s954_s8 = scalar_select %p38_p9, %s829_s11, %s40_s30  }
  0x1a   : > { %s161_s23 = scalar_lea.vmem [#allocation2], %s604_s7  ;;  %s170_s18 = sshll.u32 %s169_s22, 4  ;;  %s171_s18 = int_to_ptr.hbm [resolvable:$true] %s170_s18 }
  0x1b   : > { %s172_s25 = sshll.u32 %s161_s23, 4  ;;  %p631_p2 = pnand %p639_p7, %p939_p3  ;;  %s173_s25 = int_to_ptr.vmem [resolvable:$true] %s172_s25 }
  0x1c   : > { %s158_s26 = scalar_lea.sflag [#allocation3], %s157_s6  ;;  %184 = sbr.rel (%p920_p8) target bundleno = 107 (0x6b), region = 28 }
  0x1d   : > { %633 = dma.hbm_to_vmem [thread:$0]  (!%p631_p2), %s171_s18, 8192, %s173_s25, %s158_s26, %s844_s27, %s844_s27, %s845_s28  }
  0x1e   : > { %s968_s30 = sand.u32 (!%p920_p8), 1, %s825_s10  }
  0x1f   : > { %s608_s5 = sshll.u32 (!%p920_p8), %s968_s30, 9  ;;  %s187_s7 = scalar_lea.sflag (!%p920_p8), [#allocation3], %s968_s30 }
  0x20   : > { %s972_s15 = scalar_lea.vmem (!%p920_p8), [#allocation2], %s608_s5 }
  0x21   : > { %808 = dma.done.wait (%p907_p4), %s187_s7, 8192  }
  0x22   : > { %810 = vsyncadd (%p907_p4), %s187_s7, 4294959104 }
  0x23   : > { %812 = dma.done.wait (%p897_p1), [#allocation6], 8192  }
  0x24   : > { %814 = vsyncadd (%p897_p1), [#allocation6], 4294959104  ;;  %v225_v0 = vld [vmem:[%s972_s15] sm:$0xff]  ;;  %v226_v2 = vld [vmem:[%s972_s15 + $0x8] sm:$0xff]  ;;  %s987_s17 = scalar_lea.vmem [#allocation7], %s608_s5  ;;  %s617_s19 = sshll.u32 %s833_s12, 9 }
  0x25   : > { %v289_v1 = vld [vmem:[#allocation5] sm:$0xff]  ;;  %v290_v4 = vld [vmem:[#allocation5 + $0x8] sm:$0xff]  ;;  %v227_v5 = vld [vmem:[%s972_s15 + $0x10] sm:$0xff]  ;;  %s496_s27 = scalar_lea.hbm %s1153_s2, %s617_s19  ;;  %s497_s28 = sshll.u32 %s987_s17, 4  ;;  %s498_s28 = int_to_ptr.vmem [resolvable:$true] %s497_s28 }
  0x26   : > { %v353_v3 = vadd.f32 %v289_v1, %v225_v0  ;;  %v291_v6 = vld [vmem:[#allocation5 + $0x10] sm:$0xff]  ;;  %v354_v7 = vadd.f32 %v290_v4, %v226_v2  ;;  %v228_v9 = vld [vmem:[%s972_s15 + $0x18] sm:$0xff]  ;;  %v229_v11 = vld [vmem:[%s972_s15 + $0x20] sm:$0xff]  ;;  %s499_s3 = sshll.u32 %s496_s27, 4  ;;  %s482_s6 = scalar_lea.sflag [#allocation4], %s968_s30  ;;  %s500_s3 = int_to_ptr.hbm [resolvable:$true] %s499_s3 }
  0x27   : > { %v355_v8 = vadd.f32 %v291_v6, %v227_v5  ;;  %v292_v10 = vld [vmem:[#allocation5 + $0x18] sm:$0xff]  ;;  %v293_v13 = vld [vmem:[#allocation5 + $0x20] sm:$0xff]  ;;  %v230_v14 = vld [vmem:[%s972_s15 + $0x28] sm:$0xff]  ;;  %s769_s16 = sshra.s32 %s500_s3, 4  ;;  %s775_s25 = scalar_lea.hbm %s1153_s2, 1024  ;;  %s770_s16 = int_to_ptr.hbm [resolvable:$true] %s769_s16 }
  0x28   : > { %417 = vst [vmem:[%s987_s17] sm:$0xff] %v353_v3  ;;  %v356_v12 = vadd.f32 %v292_v10, %v228_v9  ;;  %v294_v15 = vld [vmem:[#allocation5 + $0x28] sm:$0xff]  ;;  %v357_v16 = vadd.f32 %v293_v13, %v229_v11  ;;  %v231_v18 = vld [vmem:[%s972_s15 + $0x30] sm:$0xff]  ;;  %v232_v20 = vld [vmem:[%s972_s15 + $0x38] sm:$0xff]  ;;  %s771_s21 = scalar_lea.hbm %s770_s16, 512  ;;  %p776_p10 = scmp.lt.s32.totalorder %s770_s16, %s1153_s2 }
  0x29   : > { %418 = vst [vmem:[%s987_s17 + $0x8] sm:$0xff] %v354_v7  ;;  %v358_v17 = vadd.f32 %v294_v15, %v230_v14  ;;  %v295_v19 = vld [vmem:[#allocation5 + $0x30] sm:$0xff]  ;;  %v296_v22 = vld [vmem:[#allocation5 + $0x38] sm:$0xff]  ;;  %v233_v23 = vld [vmem:[%s972_s15 + $0x40] sm:$0xff]  ;;  %p772_p1 = scmp.ne.s32.totalorder %s770_s16, %s771_s21  ;;  %p777_p12 = scmp.lt.s32.totalorder %s775_s25, %s771_s21 }
  0x2a   : > { %419 = vst [vmem:[%s987_s17 + $0x10] sm:$0xff] %v355_v8  ;;  %v359_v21 = vadd.f32 %v295_v19, %v231_v18  ;;  %v297_v24 = vld [vmem:[#allocation5 + $0x40] sm:$0xff]  ;;  %v360_v25 = vadd.f32 %v296_v22, %v232_v20  ;;  %v234_v26 = vld [vmem:[%s972_s15 + $0x48] sm:$0xff]  ;;  %v235_v28 = vld [vmem:[%s972_s15 + $0x50] sm:$0xff] }
  0x2b   : > { %420 = vst [vmem:[%s987_s17 + $0x18] sm:$0xff] %v356_v12  ;;  %v298_v27 = vld [vmem:[#allocation5 + $0x48] sm:$0xff]  ;;  %v361_v29 = vadd.f32 %v297_v24, %v233_v23  ;;  %v299_v30 = vld [vmem:[#allocation5 + $0x50] sm:$0xff]  ;;  %v236_v31 = vld [vmem:[%s972_s15 + $0x58] sm:$0xff]  ;;  %p773_p4 = pnand %p772_p1, %p945_p5  ;;  %p778_p13 = por %p777_p12, %p776_p10 }
  0x2c   : > { %421 = vst [vmem:[%s987_s17 + $0x20] sm:$0xff] %v357_v16  ;;  %v300_v32 = vld [vmem:[#allocation5 + $0x58] sm:$0xff]  ;;  %v362_v33 = vadd.f32 %v298_v27, %v234_v26  ;;  %v237_v34 = vld [vmem:[%s972_s15 + $0x60] sm:$0xff]  ;;  %v363_v36 = vadd.f32 %v299_v30, %v235_v28  ;;  %v238_v37 = vld [vmem:[%s972_s15 + $0x68] sm:$0xff] }
  0x2d   : > { %422 = vst [vmem:[%s987_s17 + $0x28] sm:$0xff] %v358_v17  ;;  %v301_v35 = vld [vmem:[#allocation5 + $0x60] sm:$0xff]  ;;  %v302_v38 = vld [vmem:[#allocation5 + $0x68] sm:$0xff]  ;;  %v364_v39 = vadd.f32 %v300_v32, %v236_v31  ;;  %v239_v40 = vld [vmem:[%s972_s15 + $0x70] sm:$0xff]  ;;  %p774_p8 = pneg %p773_p4 }
  0x2e   : > { %423 = vst [vmem:[%s987_s17 + $0x30] sm:$0xff] %v359_v21  ;;  %v303_v41 = vld [vmem:[#allocation5 + $0x70] sm:$0xff]  ;;  %v365_v42 = vadd.f32 %v301_v35, %v237_v34  ;;  %v240_v43 = vld [vmem:[%s972_s15 + $0x78] sm:$0xff]  ;;  %v366_v45 = vadd.f32 %v302_v38, %v238_v37  ;;  %v241_v46 = vld [vmem:[%s972_s15 + $0x80] sm:$0xff] }
  0x2f   : > { %424 = vst [vmem:[%s987_s17 + $0x38] sm:$0xff] %v360_v25  ;;  %v304_v44 = vld [vmem:[#allocation5 + $0x78] sm:$0xff]  ;;  %v305_v47 = vld [vmem:[#allocation5 + $0x80] sm:$0xff]  ;;  %v367_v48 = vadd.f32 %v303_v41, %v239_v40  ;;  %v242_v49 = vld [vmem:[%s972_s15 + $0x88] sm:$0xff]  ;;  %p779_p0 = pnand %p778_p13, %p774_p8 }
  0x30   : > { %425 = vst [vmem:[%s987_s17 + $0x40] sm:$0xff] %v361_v29  ;;  %v306_v50 = vld [vmem:[#allocation5 + $0x88] sm:$0xff]  ;;  %v368_v51 = vadd.f32 %v304_v44, %v240_v43  ;;  %v243_v52 = vld [vmem:[%s972_s15 + $0x90] sm:$0xff]  ;;  %v369_v54 = vadd.f32 %v305_v47, %v241_v46  ;;  %v244_v55 = vld [vmem:[%s972_s15 + $0x98] sm:$0xff] }
  0x31   : > { %426 = vst [vmem:[%s987_s17 + $0x48] sm:$0xff] %v362_v33  ;;  %v307_v53 = vld [vmem:[#allocation5 + $0x90] sm:$0xff]  ;;  %v308_v56 = vld [vmem:[#allocation5 + $0x98] sm:$0xff]  ;;  %v370_v57 = vadd.f32 %v306_v50, %v242_v49  ;;  %v245_v58 = vld [vmem:[%s972_s15 + $0xa0] sm:$0xff] }
  0x32   : > { %427 = vst [vmem:[%s987_s17 + $0x50] sm:$0xff] %v363_v36  ;;  %v309_v59 = vld [vmem:[#allocation5 + $0xa0] sm:$0xff]  ;;  %v371_v60 = vadd.f32 %v307_v53, %v243_v52  ;;  %v246_v61 = vld [vmem:[%s972_s15 + $0xa8] sm:$0xff]  ;;  %v372_v63 = vadd.f32 %v308_v56, %v244_v55  ;;  %v247_v0 = vld [vmem:[%s972_s15 + $0xb0] sm:$0xff] }
  0x33   : > { %428 = vst [vmem:[%s987_s17 + $0x58] sm:$0xff] %v364_v39  ;;  %v310_v62 = vld [vmem:[#allocation5 + $0xa8] sm:$0xff]  ;;  %v311_v1 = vld [vmem:[#allocation5 + $0xb0] sm:$0xff]  ;;  %v373_v2 = vadd.f32 %v309_v59, %v245_v58  ;;  %v248_v3 = vld [vmem:[%s972_s15 + $0xb8] sm:$0xff] }
  0x34   : > { %429 = vst [vmem:[%s987_s17 + $0x60] sm:$0xff] %v365_v42  ;;  %v312_v4 = vld [vmem:[#allocation5 + $0xb8] sm:$0xff]  ;;  %v374_v5 = vadd.f32 %v310_v62, %v246_v61  ;;  %v249_v6 = vld [vmem:[%s972_s15 + $0xc0] sm:$0xff]  ;;  %v375_v8 = vadd.f32 %v311_v1, %v247_v0  ;;  %v250_v9 = vld [vmem:[%s972_s15 + $0xc8] sm:$0xff] }
  0x35   : > { %430 = vst [vmem:[%s987_s17 + $0x68] sm:$0xff] %v366_v45  ;;  %v313_v7 = vld [vmem:[#allocation5 + $0xc0] sm:$0xff]  ;;  %v314_v10 = vld [vmem:[#allocation5 + $0xc8] sm:$0xff]  ;;  %v376_v11 = vadd.f32 %v312_v4, %v248_v3  ;;  %v251_v12 = vld [vmem:[%s972_s15 + $0xd0] sm:$0xff] }
  0x36   : > { %431 = vst [vmem:[%s987_s17 + $0x70] sm:$0xff] %v367_v48  ;;  %v315_v13 = vld [vmem:[#allocation5 + $0xd0] sm:$0xff]  ;;  %v377_v14 = vadd.f32 %v313_v7, %v249_v6  ;;  %v252_v15 = vld [vmem:[%s972_s15 + $0xd8] sm:$0xff]  ;;  %v378_v17 = vadd.f32 %v314_v10, %v250_v9  ;;  %v253_v18 = vld [vmem:[%s972_s15 + $0xe0] sm:$0xff] }
  0x37   : > { %432 = vst [vmem:[%s987_s17 + $0x78] sm:$0xff] %v368_v51  ;;  %v316_v16 = vld [vmem:[#allocation5 + $0xd8] sm:$0xff]  ;;  %v317_v19 = vld [vmem:[#allocation5 + $0xe0] sm:$0xff]  ;;  %v379_v20 = vadd.f32 %v315_v13, %v251_v12  ;;  %v254_v21 = vld [vmem:[%s972_s15 + $0xe8] sm:$0xff] }
  0x38   : > { %433 = vst [vmem:[%s987_s17 + $0x80] sm:$0xff] %v369_v54  ;;  %v318_v22 = vld [vmem:[#allocation5 + $0xe8] sm:$0xff]  ;;  %v380_v23 = vadd.f32 %v316_v16, %v252_v15  ;;  %v255_v24 = vld [vmem:[%s972_s15 + $0xf0] sm:$0xff]  ;;  %v381_v26 = vadd.f32 %v317_v19, %v253_v18  ;;  %v256_v27 = vld [vmem:[%s972_s15 + $0xf8] sm:$0xff] }
  0x39   : > { %434 = vst [vmem:[%s987_s17 + $0x88] sm:$0xff] %v370_v57  ;;  %v319_v25 = vld [vmem:[#allocation5 + $0xf0] sm:$0xff]  ;;  %v320_v28 = vld [vmem:[#allocation5 + $0xf8] sm:$0xff]  ;;  %v382_v29 = vadd.f32 %v318_v22, %v254_v21  ;;  %v257_v30 = vld [vmem:[%s972_s15 + $0x100] sm:$0xff] }
  0x3a   : > { %435 = vst [vmem:[%s987_s17 + $0x90] sm:$0xff] %v371_v60  ;;  %v321_v31 = vld [vmem:[#allocation5 + $0x100] sm:$0xff]  ;;  %v383_v32 = vadd.f32 %v319_v25, %v255_v24  ;;  %v258_v33 = vld [vmem:[%s972_s15 + $0x108] sm:$0xff]  ;;  %v384_v35 = vadd.f32 %v320_v28, %v256_v27  ;;  %v259_v36 = vld [vmem:[%s972_s15 + $0x110] sm:$0xff] }
  0x3b   : > { %436 = vst [vmem:[%s987_s17 + $0x98] sm:$0xff] %v372_v63  ;;  %v322_v34 = vld [vmem:[#allocation5 + $0x108] sm:$0xff]  ;;  %v323_v37 = vld [vmem:[#allocation5 + $0x110] sm:$0xff]  ;;  %v385_v38 = vadd.f32 %v321_v31, %v257_v30  ;;  %v260_v39 = vld [vmem:[%s972_s15 + $0x118] sm:$0xff] }
  0x3c   : > { %437 = vst [vmem:[%s987_s17 + $0xa0] sm:$0xff] %v373_v2  ;;  %v324_v40 = vld [vmem:[#allocation5 + $0x118] sm:$0xff]  ;;  %v386_v41 = vadd.f32 %v322_v34, %v258_v33  ;;  %v261_v42 = vld [vmem:[%s972_s15 + $0x120] sm:$0xff]  ;;  %v387_v44 = vadd.f32 %v323_v37, %v259_v36  ;;  %v262_v45 = vld [vmem:[%s972_s15 + $0x128] sm:$0xff] }
  0x3d   : > { %438 = vst [vmem:[%s987_s17 + $0xa8] sm:$0xff] %v374_v5  ;;  %v325_v43 = vld [vmem:[#allocation5 + $0x120] sm:$0xff]  ;;  %v326_v46 = vld [vmem:[#allocation5 + $0x128] sm:$0xff]  ;;  %v388_v47 = vadd.f32 %v324_v40, %v260_v39  ;;  %v263_v48 = vld [vmem:[%s972_s15 + $0x130] sm:$0xff] }
  0x3e   : > { %439 = vst [vmem:[%s987_s17 + $0xb0] sm:$0xff] %v375_v8  ;;  %v327_v49 = vld [vmem:[#allocation5 + $0x130] sm:$0xff]  ;;  %v389_v50 = vadd.f32 %v325_v43, %v261_v42  ;;  %v264_v51 = vld [vmem:[%s972_s15 + $0x138] sm:$0xff]  ;;  %v390_v53 = vadd.f32 %v326_v46, %v262_v45  ;;  %v265_v54 = vld [vmem:[%s972_s15 + $0x140] sm:$0xff] }
  0x3f   : > { %440 = vst [vmem:[%s987_s17 + $0xb8] sm:$0xff] %v376_v11  ;;  %v328_v52 = vld [vmem:[#allocation5 + $0x138] sm:$0xff]  ;;  %v329_v55 = vld [vmem:[#allocation5 + $0x140] sm:$0xff]  ;;  %v391_v56 = vadd.f32 %v327_v49, %v263_v48  ;;  %v266_v57 = vld [vmem:[%s972_s15 + $0x148] sm:$0xff] }
  0x40   : > { %441 = vst [vmem:[%s987_s17 + $0xc0] sm:$0xff] %v377_v14  ;;  %v330_v58 = vld [vmem:[#allocation5 + $0x148] sm:$0xff]  ;;  %v392_v59 = vadd.f32 %v328_v52, %v264_v51  ;;  %v267_v60 = vld [vmem:[%s972_s15 + $0x150] sm:$0xff]  ;;  %v393_v62 = vadd.f32 %v329_v55, %v265_v54  ;;  %v268_v63 = vld [vmem:[%s972_s15 + $0x158] sm:$0xff] }
  0x41   : > { %442 = vst [vmem:[%s987_s17 + $0xc8] sm:$0xff] %v378_v17  ;;  %v331_v61 = vld [vmem:[#allocation5 + $0x150] sm:$0xff]  ;;  %v332_v0 = vld [vmem:[#allocation5 + $0x158] sm:$0xff]  ;;  %v394_v1 = vadd.f32 %v330_v58, %v266_v57  ;;  %v269_v2 = vld [vmem:[%s972_s15 + $0x160] sm:$0xff] }
  0x42   : > { %443 = vst [vmem:[%s987_s17 + $0xd0] sm:$0xff] %v379_v20  ;;  %v333_v3 = vld [vmem:[#allocation5 + $0x160] sm:$0xff]  ;;  %v395_v4 = vadd.f32 %v331_v61, %v267_v60  ;;  %v270_v5 = vld [vmem:[%s972_s15 + $0x168] sm:$0xff]  ;;  %v396_v7 = vadd.f32 %v332_v0, %v268_v63  ;;  %v271_v8 = vld [vmem:[%s972_s15 + $0x170] sm:$0xff] }
  0x43   : > { %444 = vst [vmem:[%s987_s17 + $0xd8] sm:$0xff] %v380_v23  ;;  %v334_v6 = vld [vmem:[#allocation5 + $0x168] sm:$0xff]  ;;  %v335_v9 = vld [vmem:[#allocation5 + $0x170] sm:$0xff]  ;;  %v397_v10 = vadd.f32 %v333_v3, %v269_v2  ;;  %v272_v11 = vld [vmem:[%s972_s15 + $0x178] sm:$0xff] }
  0x44   : > { %445 = vst [vmem:[%s987_s17 + $0xe0] sm:$0xff] %v381_v26  ;;  %v336_v12 = vld [vmem:[#allocation5 + $0x178] sm:$0xff]  ;;  %v398_v13 = vadd.f32 %v334_v6, %v270_v5  ;;  %v273_v14 = vld [vmem:[%s972_s15 + $0x180] sm:$0xff]  ;;  %v399_v16 = vadd.f32 %v335_v9, %v271_v8  ;;  %v274_v17 = vld [vmem:[%s972_s15 + $0x188] sm:$0xff] }
  0x45   : > { %446 = vst [vmem:[%s987_s17 + $0xe8] sm:$0xff] %v382_v29  ;;  %v337_v15 = vld [vmem:[#allocation5 + $0x180] sm:$0xff]  ;;  %v338_v18 = vld [vmem:[#allocation5 + $0x188] sm:$0xff]  ;;  %v400_v19 = vadd.f32 %v336_v12, %v272_v11  ;;  %v275_v20 = vld [vmem:[%s972_s15 + $0x190] sm:$0xff] }
  0x46   : > { %447 = vst [vmem:[%s987_s17 + $0xf0] sm:$0xff] %v383_v32  ;;  %v339_v21 = vld [vmem:[#allocation5 + $0x190] sm:$0xff]  ;;  %v401_v22 = vadd.f32 %v337_v15, %v273_v14  ;;  %v276_v23 = vld [vmem:[%s972_s15 + $0x198] sm:$0xff]  ;;  %v402_v25 = vadd.f32 %v338_v18, %v274_v17  ;;  %v277_v26 = vld [vmem:[%s972_s15 + $0x1a0] sm:$0xff] }
  0x47   : > { %448 = vst [vmem:[%s987_s17 + $0xf8] sm:$0xff] %v384_v35  ;;  %v340_v24 = vld [vmem:[#allocation5 + $0x198] sm:$0xff]  ;;  %v341_v27 = vld [vmem:[#allocation5 + $0x1a0] sm:$0xff]  ;;  %v403_v28 = vadd.f32 %v339_v21, %v275_v20  ;;  %v278_v29 = vld [vmem:[%s972_s15 + $0x1a8] sm:$0xff] }
  0x48   : > { %449 = vst [vmem:[%s987_s17 + $0x100] sm:$0xff] %v385_v38  ;;  %v342_v30 = vld [vmem:[#allocation5 + $0x1a8] sm:$0xff]  ;;  %v404_v31 = vadd.f32 %v340_v24, %v276_v23  ;;  %v279_v32 = vld [vmem:[%s972_s15 + $0x1b0] sm:$0xff]  ;;  %v405_v34 = vadd.f32 %v341_v27, %v277_v26  ;;  %v280_v35 = vld [vmem:[%s972_s15 + $0x1b8] sm:$0xff] }
  0x49   : > { %450 = vst [vmem:[%s987_s17 + $0x108] sm:$0xff] %v386_v41  ;;  %v343_v33 = vld [vmem:[#allocation5 + $0x1b0] sm:$0xff]  ;;  %v344_v36 = vld [vmem:[#allocation5 + $0x1b8] sm:$0xff]  ;;  %v406_v37 = vadd.f32 %v342_v30, %v278_v29  ;;  %v281_v38 = vld [vmem:[%s972_s15 + $0x1c0] sm:$0xff] }
  0x4a   : > { %451 = vst [vmem:[%s987_s17 + $0x110] sm:$0xff] %v387_v44  ;;  %v345_v39 = vld [vmem:[#allocation5 + $0x1c0] sm:$0xff]  ;;  %v407_v40 = vadd.f32 %v343_v33, %v279_v32  ;;  %v282_v41 = vld [vmem:[%s972_s15 + $0x1c8] sm:$0xff]  ;;  %v408_v43 = vadd.f32 %v344_v36, %v280_v35  ;;  %v283_v44 = vld [vmem:[%s972_s15 + $0x1d0] sm:$0xff] }
  0x4b   : > { %452 = vst [vmem:[%s987_s17 + $0x118] sm:$0xff] %v388_v47  ;;  %v346_v42 = vld [vmem:[#allocation5 + $0x1c8] sm:$0xff]  ;;  %v347_v45 = vld [vmem:[#allocation5 + $0x1d0] sm:$0xff]  ;;  %v409_v46 = vadd.f32 %v345_v39, %v281_v38  ;;  %v284_v47 = vld [vmem:[%s972_s15 + $0x1d8] sm:$0xff] }
  0x4c   : > { %453 = vst [vmem:[%s987_s17 + $0x120] sm:$0xff] %v389_v50  ;;  %v348_v48 = vld [vmem:[#allocation5 + $0x1d8] sm:$0xff]  ;;  %v410_v49 = vadd.f32 %v346_v42, %v282_v41  ;;  %v285_v50 = vld [vmem:[%s972_s15 + $0x1e0] sm:$0xff]  ;;  %v411_v52 = vadd.f32 %v347_v45, %v283_v44  ;;  %v350_v54 = vld [vmem:[#allocation5 + $0x1e8] sm:$0xff] }
  0x4d   : > { %454 = vst [vmem:[%s987_s17 + $0x128] sm:$0xff] %v390_v53  ;;  %v349_v51 = vld [vmem:[#allocation5 + $0x1e0] sm:$0xff]  ;;  %v286_v53 = vld [vmem:[%s972_s15 + $0x1e8] sm:$0xff]  ;;  %v412_v55 = vadd.f32 %v348_v48, %v284_v47  ;;  %v351_v57 = vld [vmem:[#allocation5 + $0x1f0] sm:$0xff] }
  0x4e   : > { %455 = vst [vmem:[%s987_s17 + $0x130] sm:$0xff] %v391_v56  ;;  %v287_v56 = vld [vmem:[%s972_s15 + $0x1f0] sm:$0xff]  ;;  %v413_v58 = vadd.f32 %v349_v51, %v285_v50  ;;  %v352_v60 = vld [vmem:[#allocation5 + $0x1f8] sm:$0xff]  ;;  %v414_v61 = vadd.f32 %v350_v54, %v286_v53 }
  0x4f   : > { %456 = vst [vmem:[%s987_s17 + $0x138] sm:$0xff] %v392_v59  ;;  %v288_v59 = vld [vmem:[%s972_s15 + $0x1f8] sm:$0xff] }
  0x50   : > { %457 = vst [vmem:[%s987_s17 + $0x140] sm:$0xff] %v393_v62  ;;  %v415_v62 = vadd.f32 %v351_v57, %v287_v56  ;;  %v416_v63 = vadd.f32 %v352_v60, %v288_v59 }
  0x51   : > { %458 = vst [vmem:[%s987_s17 + $0x148] sm:$0xff] %v394_v1 }
  0x52   : > { %459 = vst [vmem:[%s987_s17 + $0x150] sm:$0xff] %v395_v4 }
  0x53   : > { %460 = vst [vmem:[%s987_s17 + $0x158] sm:$0xff] %v396_v7 }
  0x54   : > { %461 = vst [vmem:[%s987_s17 + $0x160] sm:$0xff] %v397_v10 }
  0x55   : > { %462 = vst [vmem:[%s987_s17 + $0x168] sm:$0xff] %v398_v13 }
  0x56   : > { %463 = vst [vmem:[%s987_s17 + $0x170] sm:$0xff] %v399_v16 }
  0x57   : > { %464 = vst [vmem:[%s987_s17 + $0x178] sm:$0xff] %v400_v19 }
  0x58   : > { %465 = vst [vmem:[%s987_s17 + $0x180] sm:$0xff] %v401_v22 }
  0x59   : > { %466 = vst [vmem:[%s987_s17 + $0x188] sm:$0xff] %v402_v25 }
  0x5a   : > { %467 = vst [vmem:[%s987_s17 + $0x190] sm:$0xff] %v403_v28 }
  0x5b   : > { %468 = vst [vmem:[%s987_s17 + $0x198] sm:$0xff] %v404_v31 }
  0x5c   : > { %469 = vst [vmem:[%s987_s17 + $0x1a0] sm:$0xff] %v405_v34 }
  0x5d   : > { %470 = vst [vmem:[%s987_s17 + $0x1a8] sm:$0xff] %v406_v37 }
  0x5e   : > { %471 = vst [vmem:[%s987_s17 + $0x1b0] sm:$0xff] %v407_v40 }
  0x5f   : > { %472 = vst [vmem:[%s987_s17 + $0x1b8] sm:$0xff] %v408_v43 }
  0x60   : > { %473 = vst [vmem:[%s987_s17 + $0x1c0] sm:$0xff] %v409_v46 }
  0x61   : > { %474 = vst [vmem:[%s987_s17 + $0x1c8] sm:$0xff] %v410_v49 }
  0x62   : > { %475 = vst [vmem:[%s987_s17 + $0x1d0] sm:$0xff] %v411_v52 }
  0x63   : > { %476 = vst [vmem:[%s987_s17 + $0x1d8] sm:$0xff] %v412_v55 }
  0x64   : > { %477 = vst [vmem:[%s987_s17 + $0x1e0] sm:$0xff] %v413_v58 }
  0x65   : > { %478 = vst [vmem:[%s987_s17 + $0x1e8] sm:$0xff] %v414_v61 }
  0x66   : > { %479 = vst [vmem:[%s987_s17 + $0x1f0] sm:$0xff] %v415_v62 }
  0x67   : > { %480 = vst [vmem:[%s987_s17 + $0x1f8] sm:$0xff] %v416_v63 }
  0x68   : > { %782 = shalt.err (!%p779_p0)
}
  0x69   : > { %s846_s30 = smov 256   ;;  %s847_s5 = smov 16  }
  0x6a   : > { %624 = dma.vmem_to_hbm [thread:$0]  (%p945_p5), %s498_s28, 8192, %s500_s3, %s482_s6, %s846_s30, %s846_s30, %s847_s5  }
  0x6b PF: > { %s514_s7 = sand.u32 1, %s821_s9   ;;  %p635_p3 = pnand %p603_p11, %p912_p6 }
  0x6c   : > { %s515_s15 = scalar_lea.sflag [#allocation4], %s514_s7 }
  0x6d   : > { %p636_p7 = pneg %p635_p3 }
  0x6f   : > { %816 = dma.done.wait (%p636_p7), %s515_s15, 8192  }
  0x70   : > { %818 = vsyncadd (%p636_p7), %s515_s15, 4294959104  ;;  %s19_s14 = sadd.s32 1, %s841_s14   ;;  %s1161_s9 = smov %s825_s10 }
  0x71   : > { %p16_p9 = scmp.ge.s32.totalorder %s19_s14, 4   ;;  %s1162_s10 = smov %s829_s11 }
  0x72   : > { %s1163_s11 = smov %s954_s8  ;;  %s1164_s12 = smov %s837_s13 }
  0x73   : > { %s1165_s13 = smov %s1167_s29  ;;  %18 = sbr.rel (!%p16_p9) target bundleno = 7 (0x7), region = 78 }
  0x78   :  { %521 = vsyncpa [#allocation3], 1 }
  0x79   :  { %523 = vsyncpa [#allocation3 + $0x1], 1 }
  0x7a   :  { %524 = vsyncpa [#allocation6], 1 }
  0x7b   :  { %525 = vsyncpa [#allocation4], 1 }
  0x7c   :  { %527 = vsyncpa [#allocation4 + $0x1], 1 }

</bundles_post_ra>
